<compile_context>
chip_gen: v7x
topology: tpu7x:2x2x1
jax: 0.10.0
libtpu: 0.0.40
codegen_flags: <defaults>
</compile_context>

<pallas_src>
import jax
import jax.numpy as jnp
from jax.experimental import pallas as pl
from jax.experimental.pallas import tpu as pltpu

_LANE = 128
_SUBLANE = 8
# Single-step tile cap (rows). ~400 B of VMEM per row of live blocks/activations
# keeps this well under the 32 MiB default scoped VMEM even on v7x (64 MiB phys).
_MAX_SINGLE_TILE = 32768
_FALLBACK_TILE = 4096


def _round_up(x, m):
    return ((x + m - 1) // m) * m


def _mlp_kernel(xt_ref, w1t_ref, w2t_ref, b2_ref, w3t_ref, b3_ref, ot_ref):
    # Feature-major fused MLP: activations are (features, TB), batch on lanes.
    xt = xt_ref[...]                                                  # (Dp, TB)
    # fc1 bias is folded into w1t (extra ones-row in xt) -> no broadcast add.
    h1 = jnp.sin(
        jnp.dot(w1t_ref[...], xt, preferred_element_type=jnp.float32)
    )                                                                 # (Hp, TB)
    h2 = jnp.tanh(
        jnp.dot(w2t_ref[...], h1, preferred_element_type=jnp.float32) + b2_ref[...]
    )                                                                 # (Hp, TB)
    out = (
        jnp.dot(w3t_ref[...], h2, preferred_element_type=jnp.float32) + b3_ref[...]
    )                                                                 # (Do, TB)
    ot_ref[...] = out.astype(ot_ref.dtype)


def many_loss_minima_forward(x, params, *, tb=None):
    """x: (B, input_dim) float32. params: (in, out) weights + (1, out) biases."""
    w1, b1 = params["w1"], params["b1"]
    w2, b2 = params["w2"], params["b2"]
    w3, b3 = params["w3"], params["b3"]

    B, d_in = x.shape
    hidden = w1.shape[1]
    out_dim = w3.shape[1]

    # ---- tile selection: single big step when it fits, else large tiles ------
    if tb is None:
        bp_min = max(_round_up(B, _LANE), _LANE)
        tb = bp_min if bp_min <= _MAX_SINGLE_TILE else _FALLBACK_TILE
    tb = max(_round_up(tb, _LANE), _LANE)
    n_tiles = pl.cdiv(max(B, 1), tb)
    bp = n_tiles * tb

    # ---- feature padding (sublane alignment) + fc1 bias folding --------------
    d_aug = d_in + 1                     # extra ones-row for the folded fc1 bias
    d_pad = _round_up(d_aug, _SUBLANE)
    h_pad = _round_up(hidden, _SUBLANE)

    # x feature-major, with a ones row (bias) and zero-padded features/batch.
    # TODO(synk): if upstream can supply x feature-major, this transpose/pad pass
    # (a separate XLA op outside the pallas_call) disappears entirely.
    xt = jnp.concatenate([x.T, jnp.ones((1, B), x.dtype)], axis=0)    # (d_aug, B)
    xt = jnp.pad(xt, ((0, d_pad - d_aug), (0, bp - B)))               # (d_pad, bp)

    # Weights padded with zero rows/cols (mathematically inert: sin(0)=tanh(0)=0).
    w1t = jnp.pad(
        jnp.concatenate([w1.T, b1.reshape(hidden, 1)], axis=1),       # (H, d_aug)
        ((0, h_pad - hidden), (0, d_pad - d_aug)),
    )                                                                 # (Hp, Dp)
    w2t = jnp.pad(w2.T, ((0, h_pad - hidden), (0, h_pad - hidden)))   # (Hp, Hp)
    b2c = jnp.pad(b2.reshape(hidden, 1), ((0, h_pad - hidden), (0, 0)))  # (Hp, 1)
    w3t = jnp.pad(w3.T, ((0, 0), (0, h_pad - hidden)))                # (Do, Hp)
    b3c = b3.reshape(out_dim, 1)                                      # (Do, 1)

    full = lambda a: pl.BlockSpec(a.shape, lambda i: (0,) * a.ndim)

    out_t = pl.pallas_call(
        _mlp_kernel,
        out_shape=jax.ShapeDtypeStruct((out_dim, bp), jnp.float32),
        grid=(n_tiles,),
        in_specs=[
            pl.BlockSpec((d_pad, tb), lambda i: (0, i)),   # streamed x tiles
            full(w1t),                                     # weights resident
            full(w2t), full(b2c),
            full(w3t), full(b3c),
        ],
        out_specs=pl.BlockSpec((out_dim, tb), lambda i: (0, i)),  # lane-dense out
        compiler_params=pltpu.CompilerParams(
            dimension_semantics=("parallel",),
        ),
    )(xt, w1t, w2t, b2c, w3t, b3c)

    # (Do, bp) -> slice off batch padding -> (B, Do). For Do=1 this is ~a reshape.
    return out_t[:, :B].T


def init_params(key, input_dim, hidden_dim=20, output_dim=1):
    """Deterministic init mimicking PyTorch nn.Linear defaults (U[-1/sqrt(fan_in), +])."""
    keys = jax.random.split(key, 6)

    def linear(kw, kb, fan_in, fan_out):
        bound = 1.0 / jnp.sqrt(jnp.float32(fan_in))
        w = jax.random.uniform(kw, (fan_in, fan_out), jnp.float32, -bound, bound)
        b = jax.random.uniform(kb, (1, fan_out), jnp.float32, -bound, bound)
        return w, b

    w1, b1 = linear(keys[0], keys[1], input_dim, hidden_dim)
    w2, b2 = linear(keys[2], keys[3], hidden_dim, hidden_dim)
    w3, b3 = linear(keys[4], keys[5], hidden_dim, output_dim)
    return {"w1": w1, "b1": b1, "w2": w2, "b2": b2, "w3": w3, "b3": b3}


def reference_forward(x, p):
    h1 = jnp.sin(x @ p["w1"] + p["b1"])
    h2 = jnp.tanh(h1 @ p["w2"] + p["b2"])
    return h2 @ p["w3"] + p["b3"]


if __name__ == "__main__":
    key = jax.random.PRNGKey(0)
    k_x, k_x2, k_x3, k_p = jax.random.split(key, 4)

    batch, input_dim, hidden_dim, output_dim = 8, 4, 20, 1
    params = init_params(k_p, input_dim, hidden_dim, output_dim)

    # Small batch (single grid step, padded lane axis).
    x = jax.random.normal(k_x, (batch, input_dim), dtype=jnp.float32)
    out = jax.block_until_ready(many_loss_minima_forward(x, params))
    ref = reference_forward(x, params)
    assert out.shape == (batch, output_dim)
    assert jnp.allclose(out, ref, atol=1e-5, rtol=1e-5)

    # Non-multiple-of-128 batch (single step, padding path).
    x2 = jax.random.normal(k_x2, (300, input_dim), dtype=jnp.float32)
    out2 = jax.block_until_ready(many_loss_minima_forward(x2, params))
    ref2 = reference_forward(x2, params)
    assert out2.shape == (300, output_dim)
    assert jnp.allclose(out2, ref2, atol=1e-5, rtol=1e-5)

    # Larger batch with a forced smaller tile (exercises grid > 1 pipelining).
    x3 = jax.random.normal(k_x3, (5000, input_dim), dtype=jnp.float32)
    out3 = jax.block_until_ready(many_loss_minima_forward(x3, params, tb=1024))
    ref3 = reference_forward(x3, params)
    assert out3.shape == (5000, output_dim)
    assert jnp.allclose(out3, ref3, atol=1e-5, rtol=1e-5)

    print("KERNEL_OK")
</pallas_src>

<mosaic_0001>
module attributes {stable_mosaic.version = 11 : i64} {
  func.func @_mlp_kernel(%arg0: i32, %arg1: memref<8x128xf32, #tpu.memory_space<vmem>>, %arg2: memref<24x8xf32, #tpu.memory_space<vmem>>, %arg3: memref<24x24xf32, #tpu.memory_space<vmem>>, %arg4: memref<24x1xf32, #tpu.memory_space<vmem>>, %arg5: memref<1x24xf32, #tpu.memory_space<vmem>>, %arg6: memref<1x1xf32, #tpu.memory_space<vmem>>, %arg7: memref<1x128xf32, #tpu.memory_space<vmem>>) attributes {dimension_semantics = [#tpu.dimension_semantics<parallel>], iteration_bounds = array<i64: 1>, scalar_prefetch = 0 : i64, scratch_operands = 0 : i64, tpu.core_type = #tpu.core_type<tc>, window_params = [{transform_indices = @transform_0, window_bounds = array<i64: 8, 128>}, {pipeline_mode = #tpu.pipeline_mode<synchronous>, transform_indices = @transform_1, window_bounds = array<i64: 24, 8>}, {pipeline_mode = #tpu.pipeline_mode<synchronous>, transform_indices = @transform_2, window_bounds = array<i64: 24, 24>}, {pipeline_mode = #tpu.pipeline_mode<synchronous>, transform_indices = @transform_3, window_bounds = array<i64: 24, 1>}, {pipeline_mode = #tpu.pipeline_mode<synchronous>, transform_indices = @transform_4, window_bounds = array<i64: 1, 24>}, {pipeline_mode = #tpu.pipeline_mode<synchronous>, transform_indices = @transform_5, window_bounds = array<i64: 1, 1>}, {transform_indices = @transform_6, window_bounds = array<i64: 1, 128>}]} {
    %c0 = arith.constant 0 : index
    %c0_0 = arith.constant 0 : index
    %0 = vector.load %arg1[%c0, %c0_0] : memref<8x128xf32, #tpu.memory_space<vmem>>, vector<8x128xf32>
    %c0_1 = arith.constant 0 : index
    %c0_2 = arith.constant 0 : index
    %1 = vector.load %arg2[%c0_1, %c0_2] : memref<24x8xf32, #tpu.memory_space<vmem>>, vector<24x8xf32>
    %cst = arith.constant dense<0.000000e+00> : vector<24x128xf32>
    %2 = tpu.matmul %1, %0, %cst {dimension_numbers = #tpu.dot_dimension_numbers<[1], [0], [0], [1], [0, 0, 1, 1], [], []>} : vector<24x8xf32>, vector<8x128xf32>, vector<24x128xf32> -> vector<24x128xf32>
    %3 = math.sin %2 : vector<24x128xf32>
    %c0_3 = arith.constant 0 : index
    %c0_4 = arith.constant 0 : index
    %4 = vector.load %arg3[%c0_3, %c0_4] : memref<24x24xf32, #tpu.memory_space<vmem>>, vector<24x24xf32>
    %cst_5 = arith.constant dense<0.000000e+00> : vector<24x128xf32>
    %5 = tpu.matmul %4, %3, %cst_5 {dimension_numbers = #tpu.dot_dimension_numbers<[1], [0], [0], [1], [0, 0, 1, 1], [], []>} : vector<24x24xf32>, vector<24x128xf32>, vector<24x128xf32> -> vector<24x128xf32>
    %c0_6 = arith.constant 0 : index
    %c0_7 = arith.constant 0 : index
    %6 = vector.load %arg4[%c0_6, %c0_7] : memref<24x1xf32, #tpu.memory_space<vmem>>, vector<24x1xf32>
    %7 = vector.broadcast %6 : vector<24x1xf32> to vector<24x128xf32>
    %8 = arith.addf %5, %7 : vector<24x128xf32>
    %9 = math.tanh %8 : vector<24x128xf32>
    %c0_8 = arith.constant 0 : index
    %c0_9 = arith.constant 0 : index
    %10 = vector.load %arg5[%c0_8, %c0_9] : memref<1x24xf32, #tpu.memory_space<vmem>>, vector<1x24xf32>
    %cst_10 = arith.constant dense<0.000000e+00> : vector<1x128xf32>
    %11 = tpu.matmul %10, %9, %cst_10 {dimension_numbers = #tpu.dot_dimension_numbers<[1], [0], [0], [1], [0, 0, 1, 1], [], []>} : vector<1x24xf32>, vector<24x128xf32>, vector<1x128xf32> -> vector<1x128xf32>
    %c0_11 = arith.constant 0 : index
    %c0_12 = arith.constant 0 : index
    %12 = vector.load %arg6[%c0_11, %c0_12] : memref<1x1xf32, #tpu.memory_space<vmem>>, vector<1x1xf32>
    %13 = vector.broadcast %12 : vector<1x1xf32> to vector<1x128xf32>
    %14 = arith.addf %11, %13 : vector<1x128xf32>
    %c0_13 = arith.constant 0 : index
    %c0_14 = arith.constant 0 : index
    %15 = vector.load %arg7[%c0_13, %c0_14] : memref<1x128xf32, #tpu.memory_space<vmem>>, vector<1x128xf32>
    tpu.vector_store %arg7[%c0_13, %c0_14], %14 {strides = array<i32>} : memref<1x128xf32, #tpu.memory_space<vmem>>, vector<1x128xf32>,
    return
  }
  func.func @transform_0(%arg0: i32) -> (i32, i32) {
    %c0_i32 = arith.constant 0 : i32
    %c0_i32_0 = arith.constant 0 : i32
    return %c0_i32, %arg0 : i32, i32
  }
  func.func @transform_1(%arg0: i32) -> (i32, i32) {
    %c0_i32 = arith.constant 0 : i32
    %c0_i32_0 = arith.constant 0 : i32
    %c0_i32_1 = arith.constant 0 : i32
    return %c0_i32, %c0_i32_0 : i32, i32
  }
  func.func @transform_2(%arg0: i32) -> (i32, i32) {
    %c0_i32 = arith.constant 0 : i32
    %c0_i32_0 = arith.constant 0 : i32
    %c0_i32_1 = arith.constant 0 : i32
    return %c0_i32, %c0_i32_0 : i32, i32
  }
  func.func @transform_3(%arg0: i32) -> (i32, i32) {
    %c0_i32 = arith.constant 0 : i32
    %c0_i32_0 = arith.constant 0 : i32
    %c0_i32_1 = arith.constant 0 : i32
    return %c0_i32, %c0_i32_0 : i32, i32
  }
  func.func @transform_4(%arg0: i32) -> (i32, i32) {
    %c0_i32 = arith.constant 0 : i32
    %c0_i32_0 = arith.constant 0 : i32
    %c0_i32_1 = arith.constant 0 : i32
    return %c0_i32, %c0_i32_0 : i32, i32
  }
  func.func @transform_5(%arg0: i32) -> (i32, i32) {
    %c0_i32 = arith.constant 0 : i32
    %c0_i32_0 = arith.constant 0 : i32
    %c0_i32_1 = arith.constant 0 : i32
    return %c0_i32, %c0_i32_0 : i32, i32
  }
  func.func @transform_6(%arg0: i32) -> (i32, i32) {
    %c0_i32 = arith.constant 0 : i32
    %c0_i32_0 = arith.constant 0 : i32
    return %c0_i32, %arg0 : i32, i32
  }
}

</mosaic_0001>

<bundles_post_ra>
// kernel: tpu_custom_call.1
= control target key start
LH: loop header
LB: loop body
LE: loop exit
PB: predicated region body
PF: predicated region fallthrough
CT: control target
= control target key end

     0   :  { %s1078_s0 = inlined_call_operand.vmem [shape: f32[8,128], index: 0, kind: input, shape index: {}]   ;;  %s1079_s1 = inlined_call_operand.vmem [shape: f32[24,8], index: 1, kind: input, shape index: {}]   ;;  %s1080_s2 = inlined_call_operand.vmem [shape: f32[24,24], index: 2, kind: input, shape index: {}]   ;;  %s1081_s3 = inlined_call_operand.vmem [shape: f32[24,1], index: 3, kind: input, shape index: {}]   ;;  %s1082_s4 = inlined_call_operand.vmem [shape: f32[1,24], index: 4, kind: input, shape index: {}]   ;;  %s1083_s5 = inlined_call_operand.<no memory space> [shape: f32[1,1], index: 5, kind: input, shape index: {}]   ;;  %s1084_s6 = inlined_call_operand.hbm [shape: f32[1,128], index: 6, kind: output, shape index: {}]  }
   0x1   :  { %v11_v0 = vstv %s1083_s5 }
   0x2   :  { %12 = vst [vmem:[#allocation2] sm:$0x1] %v11_v0 }
   0x3   :  { %v26_v1 = vld [vmem:[%s1078_s0] sm:$0xff]  ;;  %vm30_vm0 = vcmask 64512   ;;  %v786_v3 = vmov 0.0   ;;  %vm787_vm1 = vmmov 0  }
   0x4   :  { %v27_v2 = vld [vmem:[%s1079_s1] sm:$0xff]  ;;  %678 = vmatprep.subr.mxu0 %v786_v3  ;;  %680 = vmatprep.mubr.msk.f32.mxu0 %vm787_vm1, %v786_v3 }
   0x5   :  { %13 = vsyncpa [#allocation4], 0  ;;  %679 = vmatpush3.msra.mxu0 %v26_v1  ;;  %695 = vmatprep.mubr.msk.f32.mxu1 %vm787_vm1, %v786_v3  ;;  %v28_v4 = vld [vmem:[%s1079_s1 + $0x8] sm:$0xff]  ;;  %v29_v5 = vld [vmem:[%s1079_s1 + $0x10] sm:$0xff]  ;;  %v788_v6 = vmov 0.0|0.0   ;;  %v789_v9 = vmov 0  }
   0x6   :  { %681 = vmatmul.mubr.msk.f32.vlgmr.msra.gmra.mrb[0].mxu0 %vm30_vm0, %v27_v2  ;;  %713 = vmatprep.subr.bf16.mxu1 %v788_v6  ;;  %v435_v7 = vld [vmem:[%s1081_s3] sm:$0xff]  ;;  %v437_v8 = vld [vmem:[%s1081_s3 + $0x10] sm:$0xff]  ;;  %v436_v10 = vld [vmem:[%s1081_s3 + $0x8] sm:$0xff]  ;;  %v790_v39 = vmov 683565275   ;;  %s796_s16 = smov [#allocation3]  }
   0x7   :  { %683 = vmatprep.mubr.msk.f32.mxu0 %vm787_vm1, %v786_v3  ;;  %716 = vmatprep.subr.bf16.mxu0 %v788_v6  ;;  %v791_v41 = vmov 2475754826   ;;  %v792_v44 = vmov 2131351028   ;;  %v793_v46 = vmov 2102212464  }
   0x8   :  { %742 = vset.pattern.permute.xlu0 %v789_v9  ;;  %743 = vset.pattern.permute.xlu1 %v789_v9  ;;  %v794_v48 = vmov 920167782   ;;  %v795_v55 = vmov 1326507024   ;;  %s637_s17 = sshll.u32 %s796_s16, 4  ;;  %s638_s17 = int_to_ptr.vmem [resolvable:$true] %s637_s17 }
   0x9   :  { %440 = vperm.xlu0 %742, %v435_v7   ;;  %450 = vperm.xlu1 %743, %v437_v8   ;;  %v547_v11 = vld [vmem:[#allocation2] sm:$0x1]  ;;  %s762_s18 = scalar_lea.vmem %s638_s17, 16  ;;  %s766_s19 = scalar_lea.vmem %s638_s17, 32 }
   0xa   :  { %684 = vmatmul.mubr.msk.f32.gmra.mrb[2].mxu0 %vm30_vm0, %v28_v4  ;;  %p763_p0 = scmp.ne.s32.totalorder %s638_s17, %s762_s18  ;;  %p767_p1 = scmp.lt.s32.totalorder %s638_s17, %s638_s17 }
   0xb   :  { %686 = vmatprep.mubr.msk.f32.mxu0 %vm787_vm1, %v786_v3  ;;  %p768_p2 = scmp.lt.s32.totalorder %s766_s19, %s762_s18 }
   0xd   :  { %445 = vperm.xlu0 %742, %v436_v10   ;;  %550 = vperm.xlu1 %743, %v547_v11   ;;  %p769_p3 = por %p768_p2, %p767_p1 }
   0xe   :  { %687 = vmatmul.mubr.msk.f32.gmra.mrb[4].mxu0 %vm30_vm0, %v29_v5 }
   0xf   :  { %710 = vmatprep.mubr.msk.f32.mxu0 %vm787_vm1, %v786_v3  ;;  %p770_p4 = pnand %p769_p3, %p763_p0 }
  0xd9   :  { %v867_v12 = vpop.f32.mrb[0].mxu0 }
  0xda   :  { %v120_v13 = vand.u32 2147483647, %v867_v12  ;;  %v123_v14 = vand.u32 2139095040, %v867_v12  ;;  %v682_v15 = vpop.f32.mrb[1].mxu0 }
  0xdc   :  { %v124_v16 = vshrl.u32 %v123_v14, 23  ;;  %v127_v17 = vand.u32 8388607, %v120_v13 }
  0xdd   :  { %v873_v18 = vpop.f32.mrb[2].mxu0 }
  0xde   :  { %v648_v19 = vadd.s32 4294967169, %v124_v16  ;;  %v224_v20 = vand.u32 2147483647, %v873_v18  ;;  %v685_v21 = vpop.f32.mrb[3].mxu0  ;;  %v227_v22 = vand.u32 2139095040, %v873_v18  ;;  %v128_v24 = vor.u32 8388608, %v127_v17 }
  0xe0   :  { %v130_v23 = vadd.s32 1, %v648_v19  ;;  %v228_v25 = vshrl.u32 %v227_v22, 23  ;;  %v231_v26 = vand.u32 8388607, %v224_v20  ;;  %v882_v34 = vshll.u32 %v128_v24, 8 }
  0xe1   :  { %v879_v27 = vpop.f32.mrb[4].mxu0 }
  0xe2   :  { %vm131_vm2 = vcmp.gt.s32.totalorder %v130_v23, 0  ;;  %v688_v28 = vpop.f32.mrb[5].mxu0  ;;  %v652_v30 = vadd.s32 4294967169, %v228_v25  ;;  %v331_v31 = vand.u32 2139095040, %v879_v27  ;;  %v232_v35 = vor.u32 8388608, %v231_v26 }
  0xe3   :  { %v132_v29 = vsel %vm131_vm2, %v130_v23, 0  ;;  %v328_v37 = vand.u32 2147483647, %v879_v27 }
  0xe4   :  { %v133_v32 = vshrl.u32 %v132_v29, 5  ;;  %v134_v33 = vand.u32 31, %v132_v29  ;;  %v234_v36 = vadd.s32 1, %v652_v30  ;;  %v332_v43 = vshrl.u32 %v331_v31, 23 }
  0xe5   :  { %v905_v16 = vshll.u32 %v232_v35, 8  ;;  %v919_v26 = vand.u32 8388607, %v328_v37 }
  0xe6   :  { %v135_v38 = vsub.s32 32, %v134_v33  ;;  %v137_v40 = vshll.u32 %v790_v39, %v134_v33  ;;  %v140_v42 = vshll.u32 %v791_v41, %v134_v33  ;;  %v143_v45 = vshll.u32 %v792_v44, %v134_v33 }
  0xe7   :  { %v146_v47 = vshll.u32 %v793_v46, %v134_v33  ;;  %v149_v49 = vshll.u32 %v794_v48, %v134_v33  ;;  %vm152_vm3 = vcmp.lt.s32.totalorder %v133_v32, 1  ;;  %vm153_vm4 = vcmp.lt.s32.totalorder %v133_v32, 2 }
  0xe8   :  { %v138_v50 = vshrl.u32 %v791_v41, %v135_v38  ;;  %v141_v51 = vshrl.u32 %v792_v44, %v135_v38  ;;  %v144_v52 = vshrl.u32 %v793_v46, %v135_v38  ;;  %v136_v53 = vshrl.u32 %v790_v39, %v135_v38 }
  0xe9   :  { %v147_v54 = vshrl.u32 %v794_v48, %v135_v38  ;;  %v150_v56 = vshrl.u32 %v795_v55, %v135_v38  ;;  %vm154_vm5 = vcmp.lt.s32.totalorder %v133_v32, 3  ;;  %vm235_vm6 = vcmp.gt.s32.totalorder %v234_v36, 0 }
  0xea   :  { %v139_v57 = vor.u32 %v138_v50, %v137_v40  ;;  %v142_v58 = vor.u32 %v141_v51, %v140_v42  ;;  %v145_v59 = vor.u32 %v144_v52, %v143_v45  ;;  %vm155_vm7 = vcmp.lt.s32.totalorder %v133_v32, 4 }
  0xeb   :  { %v148_v60 = vor.u32 %v147_v54, %v146_v47  ;;  %v151_v61 = vor.u32 %v150_v56, %v149_v49  ;;  %v236_v62 = vsel %vm235_vm6, %v234_v36, 0  ;;  %v656_v25 = vadd.s32 4294967169, %v332_v43 }
  0xec   :  { %v156_v63 = vsel %vm152_vm3, %v136_v53, %v139_v57  ;;  %v157_v0 = vsel %vm155_vm7, %v145_v59, 2102212464  ;;  %v160_v1 = vsel %vm152_vm3, %v139_v57, %v142_v58  ;;  %v164_v2 = vsel %vm152_vm3, %v142_v58, %v145_v59 }
  0xed   :  { %v158_v4 = vsel %vm154_vm5, %v142_v58, %v157_v0  ;;  %v161_v5 = vsel %vm155_vm7, %v148_v60, 920167782  ;;  %v165_v6 = vsel %vm155_vm7, %v151_v61, 1326507024  ;;  %v237_v7 = vshrl.u32 %v236_v62, 5 }
  0xee   :  { %v159_v8 = vsel %vm153_vm4, %v156_v63, %v158_v4  ;;  %v162_v9 = vsel %vm154_vm5, %v145_v59, %v161_v5  ;;  %v166_v10 = vsel %vm154_vm5, %v148_v60, %v165_v6  ;;  %v238_v11 = vand.u32 31, %v236_v62 }
  0xef   :  { %v163_v14 = vsel %vm153_vm4, %v160_v1, %v162_v9  ;;  %v167_v15 = vsel %vm153_vm4, %v164_v2, %v166_v10  ;;  %v175_v23 = vmul.u32 %v882_v34, %v159_v8  ;;  %vm256_vm8 = vcmp.lt.s32.totalorder %v237_v7, 1 }
  0xf0   :  { %v908_v17 = vmul.u32.u64.low %v882_v34, %v167_v15  ;;  %v909_v19 = vmul.u32.u64.high %v882_v34, %v167_v15, %v908_v17  ;;  %v912_v21 = vmul.u32.u64.low %v882_v34, %v163_v14  ;;  %v913_v22 = vmul.u32.u64.high %v882_v34, %v163_v14, %v912_v21 }
  0xf1   :  { %v239_v24 = vsub.s32 32, %v238_v11  ;;  %v241_v28 = vshll.u32 %v790_v39, %v238_v11  ;;  %v244_v29 = vshll.u32 %v791_v41, %v238_v11  ;;  %v247_v30 = vshll.u32 %v792_v44, %v238_v11 }
  0xf2   :  { %v250_v34 = vshll.u32 %v793_v46, %v238_v11  ;;  %vm177_vm9 = vc.u32 %v909_v19, %v912_v21  ;;  %v178_v35 = vadd.s32 1, %v913_v22  ;;  %v253_v38 = vshll.u32 %v794_v48, %v238_v11 }
  0xf3   :  { %v242_v31 = vshrl.u32 %v791_v41, %v239_v24  ;;  %v245_v32 = vshrl.u32 %v792_v44, %v239_v24  ;;  %v248_v33 = vshrl.u32 %v793_v46, %v239_v24  ;;  %v251_v36 = vshrl.u32 %v794_v48, %v239_v24 }
  0xf4   :  { %v254_v45 = vshrl.u32 %v795_v55, %v239_v24  ;;  %v179_v47 = vsel %vm177_vm9, %v178_v35, %v913_v22  ;;  %vm257_vm10 = vcmp.lt.s32.totalorder %v237_v7, 2  ;;  %vm259_vm11 = vcmp.lt.s32.totalorder %v237_v7, 4 }
  0xf5   :  { %v243_v40 = vor.u32 %v242_v31, %v241_v28  ;;  %v246_v42 = vor.u32 %v245_v32, %v244_v29  ;;  %v249_v43 = vor.u32 %v248_v33, %v247_v30  ;;  %v252_v49 = vor.u32 %v251_v36, %v250_v34 }
  0xf6   :  { %v180_v50 = vadd.s32 %v179_v47, %v175_v23  ;;  %v240_v51 = vshrl.u32 %v790_v39, %v239_v24  ;;  %v255_v52 = vor.u32 %v254_v45, %v253_v38  ;;  %vm258_vm12 = vcmp.lt.s32.totalorder %v237_v7, 3 }
  0xf7   :  { %v261_v53 = vsel %vm259_vm11, %v249_v43, 2102212464  ;;  %v264_v54 = vsel %vm256_vm8, %v243_v40, %v246_v42  ;;  %v265_v56 = vsel %vm259_vm11, %v252_v49, 920167782  ;;  %v268_v57 = vsel %vm256_vm8, %v246_v42, %v249_v43 }
  0xf8   :  { %v181_v58 = vadd.s32 536870912, %v180_v50  ;;  %v260_v59 = vsel %vm256_vm8, %v240_v51, %v243_v40  ;;  %v266_v60 = vsel %vm258_vm12, %v249_v43, %v265_v56  ;;  %v269_v61 = vsel %vm259_vm11, %v255_v52, 1326507024 }
  0xf9   :  { %v262_v62 = vsel %vm258_vm12, %v246_v42, %v261_v53  ;;  %v267_v63 = vsel %vm257_vm10, %v264_v54, %v266_v60  ;;  %v270_v0 = vsel %vm258_vm12, %v252_v49, %v269_v61  ;;  %v338_v1 = vadd.s32 1, %v656_v25 }
  0xfa   :  { %v940_v2 = vshrl.u32 %v181_v58, 30  ;;  %v271_v4 = vsel %vm257_vm10, %v268_v57, %v270_v0  ;;  %v944_v5 = vmul.u32.u64.low %v905_v16, %v267_v63  ;;  %v945_v6 = vmul.u32.u64.high %v905_v16, %v267_v63, %v944_v5 }
  0xfb   :  { %v949_v8 = vmul.u32.u64.low %v905_v16, %v271_v4  ;;  %v950_v9 = vmul.u32.u64.high %v905_v16, %v271_v4, %v949_v8  ;;  %vm339_vm13 = vcmp.gt.s32.totalorder %v338_v1, 0  ;;  %v263_v11 = vsel %vm257_vm10, %v260_v59, %v262_v62 }
  0xfc   :  { %v183_v10 = vshll.u32 %v940_v2, 30  ;;  %v340_v14 = vsel %vm339_vm13, %v338_v1, 0  ;;  %v282_v22 = vadd.s32 1, %v945_v6  ;;  %v336_v23 = vor.u32 8388608, %v919_v26 }
  0xfd   :  { %v342_v15 = vand.u32 31, %v340_v14  ;;  %v279_v24 = vmul.u32 %v905_v16, %v263_v11  ;;  %vm281_vm14 = vc.u32 %v950_v9, %v944_v5  ;;  %v341_v33 = vshrl.u32 %v340_v14, 5 }
  0xfe   :  { %v184_v17 = vsub.s32 %v180_v50, %v183_v10  ;;  %v283_v30 = vsel %vm281_vm14, %v282_v22, %v945_v6  ;;  %v176_v52 = vadd.s32 %v912_v21, %v909_v19  ;;  %v376_v53 = vshll.u32 %v336_v23, 8 }
  0xff   :  { %v343_v25 = vsub.s32 32, %v342_v15  ;;  %v345_v28 = vshll.u32 %v790_v39, %v342_v15  ;;  %v348_v7 = vshll.u32 %v791_v41, %v342_v15  ;;  %v351_v31 = vshll.u32 %v792_v44, %v342_v15 }
 0x100   :  { %v186_v29 = vsub.s32 0, %v184_v17  ;;  %v284_v32 = vadd.s32 %v283_v30, %v279_v24  ;;  %v354_v36 = vshll.u32 %v793_v46, %v342_v15  ;;  %v357_v45 = vshll.u32 %v794_v48, %v342_v15 }
 0x101   :  { %v346_v34 = vshrl.u32 %v791_v41, %v343_v25  ;;  %v349_v26 = vshrl.u32 %v792_v44, %v343_v25  ;;  %v352_v35 = vshrl.u32 %v793_v46, %v343_v25  ;;  %v355_v38 = vshrl.u32 %v794_v48, %v343_v25 }
 0x102   :  { %v649_v16 = vmin.u32 %v186_v29, %v184_v17  ;;  %v285_v40 = vadd.s32 536870912, %v284_v32  ;;  %v358_v51 = vshrl.u32 %v795_v55, %v343_v25  ;;  %v344_v44 = vshrl.u32 %v790_v39, %v343_v25 }
 0x103   :  { %v347_v42 = vor.u32 %v346_v34, %v345_v28  ;;  %v350_v43 = vor.u32 %v349_v26, %v348_v7  ;;  %v353_v49 = vor.u32 %v352_v35, %v351_v31  ;;  %v356_v50 = vor.u32 %v355_v38, %v354_v36 }
 0x104   :  { %v188_v47 = vclz %v649_v16  ;;  %v970_v41 = vshrl.u32 %v285_v40, 30  ;;  %vm360_vm15 = vcmp.lt.s32.totalorder %v341_v33, 1  ;;  %v359_v56 = vor.u32 %v358_v51, %v357_v45 }
 0x105   :  { %vm361_vm0 = vcmp.lt.s32.totalorder %v341_v33, 2  ;;  %vm363_vm2 = vcmp.lt.s32.totalorder %v341_v33, 4  ;;  %v368_v55 = vsel %vm360_vm15, %v347_v42, %v350_v43  ;;  %vm362_vm4 = vcmp.lt.s32.totalorder %v341_v33, 3 }
 0x106   :  { %v650_v46 = vadd.s32 4294967294, %v188_v47  ;;  %v287_v54 = vshll.u32 %v970_v41, 30  ;;  %v365_v48 = vsel %vm363_vm2, %v353_v49, 2102212464  ;;  %v369_v57 = vsel %vm363_vm2, %v356_v50, 920167782 }
 0x107   :  { %v364_v19 = vsel %vm360_vm15, %v344_v44, %v347_v42  ;;  %v370_v60 = vsel %vm362_vm4, %v353_v49, %v369_v57  ;;  %v372_v61 = vsel %vm360_vm15, %v350_v43, %v353_v49  ;;  %v366_v63 = vsel %vm362_vm4, %v350_v43, %v365_v48 }
 0x108   :  { %vm651_vm3 = vcmp.lt.s32.totalorder %v650_v46, 0  ;;  %v288_v39 = vsub.s32 %v284_v32, %v287_v54  ;;  %v371_v0 = vsel %vm361_vm0, %v368_v55, %v370_v60  ;;  %v373_v1 = vsel %vm363_vm2, %v359_v56, 1326507024 }
 0x109   :  { %v191_v58 = vsel %vm651_vm3, 0, %v650_v46  ;;  %v374_v10 = vsel %vm362_vm4, %v356_v50, %v373_v1  ;;  %v984_v15 = vmul.u32.u64.low %v376_v53, %v371_v0  ;;  %v985_v22 = vmul.u32.u64.high %v376_v53, %v371_v0, %v984_v15 }
 0x10a   :  { %v192_v21 = vsub.s32 32, %v191_v58  ;;  %v196_v59 = vsub.s32 4294967266, %v191_v58  ;;  %v290_v62 = vsub.s32 0, %v288_v39  ;;  %v193_v4 = vshll.u32 %v184_v17, %v191_v58 }
 0x10b   :  { %v375_v14 = vsel %vm361_vm0, %v372_v61, %v374_v10  ;;  %v367_v30 = vsel %vm361_vm0, %v364_v19, %v366_v63  ;;  %v386_v31 = vadd.s32 1, %v985_v22  ;;  %v280_v33 = vadd.s32 %v944_v5, %v950_v9 }
 0x10c   :  { %v194_v6 = vshrl.u32 %v176_v52, %v192_v21  ;;  %v197_v8 = vadd.s32 127, %v196_v59  ;;  %v653_v11 = vmin.u32 %v290_v62, %v288_v39  ;;  %v383_v26 = vmul.u32 %v376_v53, %v367_v30 }
 0x10d   :  { %v988_v25 = vmul.u32.u64.low %v376_v53, %v375_v14  ;;  %v989_v28 = vmul.u32.u64.high %v376_v53, %v375_v14, %v988_v25  ;;  %vm122_vm7 = vcmp.lt.s32.totalorder %v867_v12, 0  ;;  %vm1005_vm8 = vcmp.le.f32.partialorder %v120_v13, 0.7853982 }
 0x10e   :  { %v195_v23 = vor.u32 %v194_v6, %v193_v4  ;;  %v198_v24 = vshll.u32 %v197_v8, 23  ;;  %v292_v29 = vclz %v653_v11  ;;  %v206_v56 = vsub.s32 4, %v940_v2 }
 0x10f   :  { %vm385_vm5 = vc.u32 %v989_v28, %v984_v15  ;;  %vm226_vm9 = vcmp.lt.s32.totalorder %v873_v18, 0  ;;  %vm1021_vm10 = vcmp.le.f32.partialorder %v224_v20, 0.7853982  ;;  %vm212_vm3 = vweird.f32 %v867_v12 }
 0x110   :  { %v199_v7 = vor.u32 4788187, %v198_v24  ;;  %v654_v17 = vadd.s32 4294967294, %v292_v29  ;;  %v202_v34 = vcvt.s32.f32 %v195_v23  ;;  %v387_v16 = vsel %vm385_vm5, %v386_v31, %v985_v22 }
 0x111   :  { %v388_v38 = vadd.s32 %v387_v16, %v383_v26  ;;  %v207_v19 = vsel %vm122_vm7, %v206_v56, %v940_v2  ;;  %vm316_vm4 = vweird.f32 %v873_v18  ;;  %vm330_vm5 = vcmp.lt.s32.totalorder %v879_v27, 0 }
 0x112   :  { %v200_v32 = vand.u32 2147483647, %v199_v7  ;;  %vm655_vm6 = vcmp.lt.s32.totalorder %v654_v17, 0  ;;  %v209_v0 = vsel %vm1005_vm8, 0, %v207_v19  ;;  %v433_v19 = vld [vmem:[%s1080_s2 + $0x8] sm:$0xff] }
 0x113   :  { %v295_v36 = vsel %vm655_vm6, 0, %v654_v17  ;;  %v389_v45 = vadd.s32 536870912, %v388_v38  ;;  %v213_v4 = vadd.s32 3, %v209_v0  ;;  %vm329_vm6 = vcmp.le.f32.partialorder %v328_v37, 0.7853982 }
 0x114   :  { %v203_v35 = vmul.f32 %v202_v34, %v200_v32  ;;  %v296_v40 = vsub.s32 32, %v295_v36  ;;  %v300_v42 = vsub.s32 4294967266, %v295_v36  ;;  %v297_v47 = vshll.u32 %v288_v39, %v295_v36 }
 0x115   :  { %v1001_v44 = vshrl.u32 %v389_v45, 30  ;;  %v310_v39 = vsub.s32 4, %v970_v41  ;;  %v214_v29 = vand.u32 3, %v213_v4 }
 0x116   :  { %v204_v43 = vxor.u32 2147483648, %v203_v35  ;;  %v298_v49 = vshrl.u32 %v280_v33, %v296_v40  ;;  %v301_v50 = vadd.s32 127, %v300_v42 }
 0x117   :  { %v391_v53 = vshll.u32 %v1001_v44, 30  ;;  %v311_v63 = vsel %vm226_vm9, %v310_v39, %v970_v41  ;;  %v384_v41 = vadd.s32 %v984_v15, %v989_v28  ;;  %vm216_vm12 = vcmp.eq.s32.totalorder %v214_v29, 0 }
 0x118   :  { %v205_v51 = vsel %vm122_vm7, %v204_v43, %v203_v35  ;;  %v299_v5 = vor.u32 %v298_v49, %v297_v47  ;;  %v302_v9 = vshll.u32 %v301_v50, 23  ;;  %v313_v20 = vsel %vm1021_vm10, 0, %v311_v63 }
 0x119   :  { %v208_v46 = vsel %vm1005_vm8, %v867_v12, %v205_v51  ;;  %v392_v48 = vsub.s32 %v388_v38, %v391_v53  ;;  %v317_v22 = vadd.s32 3, %v313_v20  ;;  %vm219_vm13 = vcmp.eq.s32.totalorder %v214_v29, 2 }
 0x11a   :  { %v303_v54 = vor.u32 4788187, %v302_v9  ;;  %744 = vcosq.f32 %v208_v46  ;;  %v306_v57 = vcvt.s32.f32 %v299_v5  ;;  %vm215_vm14 = vcmp.lt.s32.totalorder %v214_v29, 2 }
 0x11b   :  { %746 = vsinq.f32 %v208_v46  ;;  %v394_v13 = vsub.s32 0, %v392_v48  ;;  %v318_v32 = vand.u32 3, %v317_v22  ;;  %v414_v42 = vsub.s32 4, %v1001_v44 }
 0x11c   :  { %v304_v55 = vand.u32 2147483647, %v303_v54  ;;  %v553_v22 = vlaneseq }
 0x11d   :  { %v657_v21 = vmin.u32 %v394_v13, %v392_v48  ;;  %vm320_vm15 = vcmp.eq.s32.totalorder %v318_v32, 0  ;;  %vm323_vm0 = vcmp.eq.s32.totalorder %v318_v32, 2  ;;  %vm319_vm2 = vcmp.lt.s32.totalorder %v318_v32, 2 }
 0x11e   :  { %v307_v58 = vmul.f32 %v306_v57, %v304_v55  ;;  %v415_v9 = vsel %vm330_vm5, %v414_v42, %v1001_v44 }
 0x11f   :  { %v396_v60 = vclz %v657_v21  ;;  %v417_v12 = vsel %vm329_vm6, 0, %v415_v9  ;;  %v441_v21 = vpop.permute.xlu0 %440 }
 0x120   :  { %v308_v59 = vxor.u32 2147483648, %v307_v58 }
 0x121   :  { %v658_v1 = vadd.s32 4294967294, %v396_v60 }
 0x122   :  { %v309_v62 = vsel %vm226_vm9, %v308_v59, %v307_v58  ;;  %v432_v58 = vld [vmem:[%s1080_s2] sm:$0xff] }
 0x123   :  { %v312_v2 = vsel %vm1021_vm10, %v873_v18, %v309_v62  ;;  %vm659_vm11 = vcmp.lt.s32.totalorder %v658_v1, 0  ;;  %v421_v18 = vadd.s32 3, %v417_v12  ;;  %vm420_vm10 = vweird.f32 %v879_v27  ;;  %v446_v62 = vpop.permute.xlu0 %445 }
 0x124   :  { %748 = vcosq.f32 %v312_v2  ;;  %v745_v6 = vpop.eup %744  ;;  %v399_v8 = vsel %vm659_vm11, 0, %v658_v1  ;;  %vm453_vm11 = vcmask 195584   ;;  %v451_v1 = vpop.permute.xlu1 %450 }
 0x125   :  { %750 = vsinq.f32 %v312_v2  ;;  %v747_v10 = vpop.eup %746  ;;  %v400_v11 = vsub.s32 32, %v399_v8  ;;  %v404_v14 = vsub.s32 4294967266, %v399_v8  ;;  %v401_v23 = vshll.u32 %v392_v48, %v399_v8 }
 0x126   :  { %v217_v30 = vxor.u32 2147483648, %v747_v10  ;;  %v220_v7 = vxor.u32 2147483648, %v745_v6  ;;  %v422_v54 = vand.u32 3, %v421_v18 }
 0x127   :  { %v402_v24 = vshrl.u32 %v384_v41, %v400_v11  ;;  %v405_v25 = vadd.s32 127, %v404_v14  ;;  %v546_v14 = vld [vmem:[%s1082_s4] sm:$0x1] }
 0x128   :  { %v218_v16 = vsel %vm216_vm12, %v745_v6, %v217_v30  ;;  %v221_v35 = vsel %vm219_vm13, %v220_v7, %v747_v10  ;;  %vm427_vm7 = vcmp.eq.s32.totalorder %v422_v54, 2  ;;  %vm424_vm8 = vcmp.eq.s32.totalorder %v422_v54, 0 }
 0x129   :  { %v403_v17 = vor.u32 %v402_v24, %v401_v23  ;;  %v406_v31 = vshll.u32 %v405_v25, 23  ;;  %v222_v43 = vsel %vm215_vm14, %v218_v16, %v221_v35  ;;  %vm423_vm9 = vcmp.lt.s32.totalorder %v422_v54, 2  ;;  %v551_v25 = vpop.permute.xlu1 %550 }
 0x12a   :  { %v223_v51 = vsel %vm212_vm3, nan, %v222_v43  ;;  %v554_v23 = vshrl.u32 %v553_v22, 7 }
 0x12b   :  { %v407_v34 = vor.u32 4788187, %v406_v31  ;;  %v410_v28 = vcvt.s32.f32 %v403_v17 }
 0x12c   :  { %v555_v24 = vsub.s32 0, %v554_v23 }
 0x12d   :  { %v408_v15 = vand.u32 2147483647, %v407_v34 }
 0x12e   :  { %v749_v26 = vpop.eup %748  ;;  %v556_v29 = vrot.slane %v551_v25, %v555_v24 }
 0x12f   :  { %v751_v36 = vpop.eup %750  ;;  %v324_v38 = vxor.u32 2147483648, %v749_v26  ;;  %v411_v40 = vmul.f32 %v410_v28, %v408_v15 }
 0x130   :  { %v321_v33 = vxor.u32 2147483648, %v751_v36 }
 0x131   :  { %v325_v45 = vsel %vm323_vm0, %v324_v38, %v751_v36  ;;  %v412_v49 = vxor.u32 2147483648, %v411_v40 }
 0x132   :  { %v322_v47 = vsel %vm320_vm15, %v749_v26, %v321_v33 }
 0x133   :  { %v326_v50 = vsel %vm319_vm2, %v322_v47, %v325_v45  ;;  %v413_v5 = vsel %vm330_vm5, %v412_v49, %v411_v40 }
 0x134   :  { %v327_v52 = vsel %vm316_vm4, nan, %v326_v50  ;;  %v416_v53 = vsel %vm329_vm6, %v879_v27, %v413_v5  ;;  %v434_v27 = vld [vmem:[%s1080_s2 + $0x10] sm:$0xff] }
 0x135   :  { %v714_v46 = vpack.c.bf16 %v327_v52, %v223_v51  ;;  %752 = vcosq.f32 %v416_v53 }
 0x136   :  { %754 = vsinq.f32 %v416_v53 }
 0x137   :  { %715 = vmatpush3.bf16.msra.mxu1 %v714_v46 }
 0x138   :  { %693 = vmatprep.subr.mxu1 %v786_v3 }
 0x13f   :  { %v753_v56 = vpop.eup %752 }
 0x140   :  { %v755_v48 = vpop.eup %754  ;;  %v428_v55 = vxor.u32 2147483648, %v753_v56 }
 0x141   :  { %v425_v57 = vxor.u32 2147483648, %v755_v48 }
 0x142   :  { %v429_v37 = vsel %vm427_vm7, %v428_v55, %v755_v48 }
 0x143   :  { %v426_v44 = vsel %vm424_vm8, %v753_v56, %v425_v57 }
 0x144   :  { %v430_v13 = vsel %vm423_vm9, %v426_v44, %v429_v37 }
 0x145   :  { %v431_v39 = vsel %vm420_vm10, nan, %v430_v13 }
 0x146   :  { %694 = vmatpush3.msra.mxu1 %v431_v39 }
 0x147   :  { %696 = vmatmul.mubr.msk.f32.vlgmr.msra.gmra.mrb[0].mxu1 %vm453_vm11, %v432_v58 }
 0x148   :  { %698 = vmatprep.mubr.msk.f32.mxu1 %vm787_vm1, %v786_v3 }
 0x14b   :  { %699 = vmatmul.mubr.msk.f32.gmra.mrb[2].mxu1 %vm453_vm11, %v433_v19 }
 0x14c   :  { %701 = vmatprep.mubr.msk.f32.mxu1 %vm787_vm1, %v786_v3 }
 0x14f   :  { %702 = vmatmul.mubr.msk.f32.gmra.mrb[4].mxu1 %vm453_vm11, %v434_v27 }
 0x21a   :  { %v529_v59 = vpop.f32.mrb[0].mxu1 }
 0x21b   :  { %v697_v60 = vpop.f32.mrb[1].mxu1  ;;  %v530_v61 = vadd.f32 %v529_v59, %v441_v21 }
 0x21d   :  { %756 = vtanh.f32 %v530_v61 }
 0x21e   :  { %v534_v63 = vpop.f32.mrb[2].mxu1 }
 0x21f   :  { %v535_v0 = vadd.f32 %v534_v63, %v446_v62  ;;  %v700_v2 = vpop.f32.mrb[3].mxu1 }
 0x221   :  { %758 = vtanh.f32 %v535_v0 }
 0x222   :  { %v539_v4 = vpop.f32.mrb[4].mxu1 }
 0x223   :  { %v540_v20 = vadd.f32 %v539_v4, %v451_v1  ;;  %v703_v6 = vpop.f32.mrb[5].mxu1 }
 0x225   :  { %760 = vtanh.f32 %v540_v20 }
 0x227   :  { %v757_v8 = vpop.eup %756 }
 0x22b   :  { %v759_v10 = vpop.eup %758 }
 0x22c   :  { %v717_v41 = vpack.c.bf16 %v759_v10, %v757_v8 }
 0x22e   :  { %718 = vmatpush3.bf16.msra.mxu0 %v717_v41 }
 0x22f   :  { %v761_v11 = vpop.eup %760  ;;  %708 = vmatprep.subr.mxu0 %v786_v3 }
 0x232   :  { %709 = vmatpush3.msra.mxu0 %v761_v11 }
 0x233   :  { %711 = vmatmul.mubr.msk.f32.vlgmr.msra.gmra.mrb[6].mxu0 %vm453_vm11, %v546_v14 }
 0x306   :  { %v626_v30 = vpop.f32.mrb[6].mxu0 }
 0x307   :  { %v627_v7 = vadd.f32 %v626_v30, %v556_v29  ;;  %v712_v17 = vpop.f32.mrb[7].mxu0 }
 0x309   :  { %630 = vst [vmem:[#allocation3] sm:$0x1] %v627_v7 }
 0x30a   :  { %773 = shalt.err (!%p770_p4)
}
 0x30b   :  { %s774_s21 = scalar_lea.hbm %s1084_s6, 16 }
 0x30c   :  { %p775_p5 = scmp.ne.s32.totalorder %s1084_s6, %s774_s21  ;;  %p778_p6 = scmp.lt.u32.totalorder %s774_s21, %s1084_s6 }
 0x30e   :  { %p780_p7 = pnand %p778_p6, %p775_p5 }
 0x310   :  { %783 = shalt.err (!%p780_p7)
}
 0x311   :  { %640 = dma.vmem_to_hbm [thread:$0]  %s638_s17, 16, %s1084_s6, [#allocation4]  }
 0x312   :  { %784 = dma.done.wait [#allocation4], 16  }
 0x313   :  { %785 = vsyncadd [#allocation4], 4294967280 }
 0x314   :  { %644 = vsyncpa [#allocation4], 1 }

</bundles_post_ra>
